<compile_context>
chip_gen: v7x
topology: tpu7x:2x2x1
jax: 0.10.0
libtpu: 0.0.40
codegen_flags: <defaults>
</compile_context>

<pallas_src>
import functools

import jax
import jax.numpy as jnp
from jax.experimental import pallas as pl
from jax.experimental.pallas import tpu as pltpu

NEG_SLOPE = 0.1          # nn.LeakyReLU(negative_slope=0.1)
BN_EPS = 1e-5
MAX_BLOCK_B = 2048       # row-tile cap (amortization, not a VMEM limit)
VMEM_LIMIT_BYTES = 48 * 1024 * 1024   # footprint ~12 MiB at block_B=2048; raise
                                      # v5e's 16 MiB scoped default, < v7x physical


def _leaky(y):
    # mul + max (2 VALU ops) instead of cmp + select + mul (3 VALU ops).
    return jnp.maximum(y, NEG_SLOPE * y)


def _round_up(a, b):
    return (a + b - 1) // b * b


def dex_evaluator_kernel(x_ref, w01_ref, b01_ref, w2_ref, b2_ref,
                         wout_ref, bout_ref, o_ref):
    """One batch tile of the whole network (eval-mode BN folded into W / b).

    x_ref   : (bB, N)    f32  activations (concat [f_O, g_O])
    w01_ref : (3, N, 2N) bf16 fused [fc_path1 | fc_path2_1] weights (BN folded)
    b01_ref : (3, 1, 2N) f32  fused folded biases
    w2_ref  : (3, N, N)  bf16 fc_path2_2 weights (BN folded)
    b2_ref  : (3, 1, N)  f32  folded biases
    wout_ref: (N, 128)   bf16 fc_out weight zero-padded 3 -> 128 lanes
    bout_ref: (1, 128)   f32  fc_out bias zero-padded
    o_ref   : (bB, 128)  f32  sigmoid output (only [:, :3] is meaningful)
    """
    bB, N = x_ref.shape

    def chain(x):
        # Three OldFCResBlocks (each followed by the module's outer residual),
        # then fc_out + sigmoid.  Rows are independent end-to-end.
        for blk in range(3):
            xb = x.astype(jnp.bfloat16)
            # Fused (N, 2N) matmul: columns [:N] = path1, [N:] = path2_1.
            y01 = jnp.dot(xb, w01_ref[blk], preferred_element_type=jnp.float32)
            y01 = _leaky(y01 + b01_ref[blk])
            x1 = y01[:, :N]
            x2 = y01[:, N:]
            y2 = jnp.dot(x2.astype(jnp.bfloat16), w2_ref[blk],
                         preferred_element_type=jnp.float32)
            x2 = _leaky(y2 + b2_ref[blk])
            x = _leaky(x1 + x2) + x          # resblock output + outer residual
        y = jnp.dot(x.astype(jnp.bfloat16), wout_ref[...],
                    preferred_element_type=jnp.float32) + bout_ref[...]
        return jax.nn.sigmoid(y)

    if bB >= 16:
        # Two independent row-half chains in one basic block -> the scheduler
        # can overlap one half's VPU epilogue with the other half's MXU work.
        h = bB // 2                      # bB is a multiple of 16 -> h % 8 == 0
        out_a = chain(x_ref[:h, :])
        out_b = chain(x_ref[h:, :])
        o_ref[:h, :] = out_a
        o_ref[h:, :] = out_b
    else:
        o_ref[...] = chain(x_ref[...])


def _row_tile(b8):
    """Static row-tile choice from the (sublane-rounded) batch size."""
    if b8 <= 8:
        return 8
    # >= 2 tiles so both v7x TensorCores get work on the "parallel" axis; each
    # tile as large as possible (<= MAX_BLOCK_B) to amortize per-step overhead
    # and the MXU RHS push; multiple of 16 so the kernel can split half-chains.
    n_tiles = max(2, pl.cdiv(b8, MAX_BLOCK_B))
    return min(MAX_BLOCK_B, _round_up(pl.cdiv(b8, n_tiles), 16))


def dex_evaluator_forward_packed(x, w01, b01, w2, b2, wout, bout):
    """Forward pass from an already-concatenated (B, n_inputs) f32 buffer.

    Callers with large refine()-style batches should use this entry point with
    B a multiple of 8 to avoid any wrapper-side copies before the kernel DMA.
    """
    B, N = x.shape
    B8 = _round_up(B, 8)
    if B8 != B:                          # only ragged-sublane batches pay a pad
        x = jnp.pad(x, ((0, B8 - B), (0, 0)))
    block_B = _row_tile(B8)
    grid = (pl.cdiv(B8, block_B),)       # ragged tail tile is masked by Pallas

    def full_spec(arr):
        zeros = (0,) * arr.ndim
        return pl.BlockSpec(arr.shape, lambda i, z=zeros: z)

    out = pl.pallas_call(
        dex_evaluator_kernel,
        out_shape=jax.ShapeDtypeStruct((B8, 128), jnp.float32),
        grid_spec=pltpu.PrefetchScalarGridSpec(
            num_scalar_prefetch=0,
            grid=grid,
            in_specs=[
                pl.BlockSpec((block_B, N), lambda i: (i, 0)),
                full_spec(w01), full_spec(b01),
                full_spec(w2), full_spec(b2),
                full_spec(wout), full_spec(bout),
            ],
            out_specs=pl.BlockSpec((block_B, 128), lambda i: (i, 0)),
        ),
        compiler_params=pltpu.CompilerParams(
            dimension_semantics=("parallel",),
            vmem_limit_bytes=VMEM_LIMIT_BYTES,
        ),
    )(x, w01, b01, w2, b2, wout, bout)
    return out[:B, :3]


@jax.jit
def dex_evaluator_forward(f_O, g_O, w01, b01, w2, b2, wout, bout):
    # Concat kept in plain JAX (required by the torch-style API); everything
    # else (tiling, pipelining, megacore sharding) is inside the pallas_call.
    x = jnp.concatenate([f_O, g_O], axis=1).astype(jnp.float32)
    return dex_evaluator_forward_packed(x, w01, b01, w2, b2, wout, bout)


def init_params(key, n_inputs):
    """Deterministic synthetic eval-mode parameters (f32, BN folded).

    BN scale is folded into the weight columns, BN mean / linear bias / BN beta
    into a single per-feature bias.  fc_path1 and fc_path2_1 are fused into one
    (n, 2n) weight per block.  fc_out is zero-padded to 128 output lanes.
    """
    n = n_inputs

    def folded_layer(k, in_f, out_f):
        k_w, k_b, k_g, k_be, k_mu, k_var = jax.random.split(k, 6)
        W = jax.random.normal(k_w, (out_f, in_f), jnp.float32) / jnp.sqrt(in_f)
        b = 0.05 * jax.random.normal(k_b, (out_f,), jnp.float32)
        gamma = 1.0 + 0.1 * jax.random.normal(k_g, (out_f,), jnp.float32)
        beta = 0.05 * jax.random.normal(k_be, (out_f,), jnp.float32)
        mu = 0.05 * jax.random.normal(k_mu, (out_f,), jnp.float32)
        var = 0.9 + 0.1 * jnp.abs(jax.random.normal(k_var, (out_f,), jnp.float32))
        s = gamma / jnp.sqrt(var + BN_EPS)
        W_fold = (W * s[:, None]).T            # (in, out), BN scale folded in
        b_fold = s * (b - mu) + beta
        return W_fold, b_fold

    w01, b01, w2, b2 = [], [], [], []
    for _ in range(3):
        key, k1, k2, k3 = jax.random.split(key, 4)
        Wp1, bp1 = folded_layer(k1, n, n)      # fc_path1 + bn_path1
        Wp21, bp21 = folded_layer(k2, n, n)    # fc_path2_1 + bn_path2_1
        Wp22, bp22 = folded_layer(k3, n, n)    # fc_path2_2 + bn_path2_2
        w01.append(jnp.concatenate([Wp1, Wp21], axis=1))   # (n, 2n)
        b01.append(jnp.concatenate([bp1, bp21], axis=0))   # (2n,)
        w2.append(Wp22)
        b2.append(bp22)

    key, k_wo, k_bo = jax.random.split(key, 3)
    W_out = jax.random.normal(k_wo, (3, n), jnp.float32) / jnp.sqrt(n)   # (out, in)
    b_out = 0.05 * jax.random.normal(k_bo, (3,), jnp.float32)
    wout = jnp.zeros((n, 128), jnp.float32).at[:, :3].set(W_out.T)       # lane-dense pad
    bout = jnp.zeros((1, 128), jnp.float32).at[0, :3].set(b_out)

    return (jnp.stack(w01), jnp.stack(b01)[:, None, :],
            jnp.stack(w2), jnp.stack(b2)[:, None, :],
            wout, bout)


def prepare_params(params):
    """One-time cast of weight matrices to bf16 (MXU input dtype).

    Done at load time, NOT per forward call: removes the per-call f32->bf16
    convert pass over ~660 KB of weights that would otherwise sit in front of
    every kernel launch in the tight refine() loop.
    """
    w01, b01, w2, b2, wout, bout = params
    return (w01.astype(jnp.bfloat16), b01,
            w2.astype(jnp.bfloat16), b2,
            wout.astype(jnp.bfloat16), bout)


def ref_forward(f_O, g_O, w01, b01, w2, b2, wout, bout, mirror_bf16=False):
    """Pure-JAX reference of the same eval-mode forward pass.

    mirror_bf16=True mimics the kernel's bf16 matmul inputs (tight comparison);
    mirror_bf16=False keeps activations in f32 (loose comparison — weights are
    already bf16-rounded in the prepared params).
    """
    act = (lambda a: a.astype(jnp.bfloat16)) if mirror_bf16 else (lambda a: a)
    dot = functools.partial(jnp.dot, precision=jax.lax.Precision.HIGHEST,
                            preferred_element_type=jnp.float32)
    x = jnp.concatenate([f_O, g_O], axis=1).astype(jnp.float32)
    N = x.shape[1]
    for blk in range(3):
        y01 = _leaky(dot(act(x), w01[blk]) + b01[blk])
        x1, x2 = y01[:, :N], y01[:, N:]
        x2 = _leaky(dot(act(x2), w2[blk]) + b2[blk])
        x = _leaky(x1 + x2) + x
    y = dot(act(x), wout) + bout
    return jax.nn.sigmoid(y)[:, :3]


if __name__ == "__main__":
    # Small shapes consistent with the module: n_inputs = n_pts + in_grasp = 128.
    B, n_pts, in_grasp = 2, 120, 8
    key = jax.random.PRNGKey(0)
    k_f, k_g, k_p = jax.random.split(key, 3)
    f_O = jax.random.normal(k_f, (B, n_pts), jnp.float32)
    g_O = 0.5 * jax.random.normal(k_g, (B, in_grasp), jnp.float32)
    params = prepare_params(init_params(k_p, n_pts + in_grasp))

    out = dex_evaluator_forward(f_O, g_O, *params)
    jax.block_until_ready(out)
    assert out.shape == (B, 3), out.shape

    # Tight check vs a reference that mirrors the kernel's bf16 matmul inputs.
    ref_b = ref_forward(f_O, g_O, *params, mirror_bf16=True)
    assert jnp.allclose(out, ref_b, atol=2e-3, rtol=2e-3), (out, ref_b)
    # Loose check vs the f32-activation reference (bf16 activation rounding only,
    # since the weights themselves are bf16 in both).
    ref_f = ref_forward(f_O, g_O, *params, mirror_bf16=False)
    assert jnp.allclose(out, ref_f, atol=5e-2, rtol=5e-2), (out, ref_f)

    print("KERNEL_OK")
</pallas_src>

<mosaic_0001>
module attributes {stable_mosaic.version = 11 : i64} {
  func.func @dex_evaluator_kernel(%arg0: i32, %arg1: memref<8x128xf32, #tpu.memory_space<vmem>>, %arg2: memref<3x128x256xbf16, #tpu.memory_space<vmem>>, %arg3: memref<3x1x256xf32, #tpu.memory_space<vmem>>, %arg4: memref<3x128x128xbf16, #tpu.memory_space<vmem>>, %arg5: memref<3x1x128xf32, #tpu.memory_space<vmem>>, %arg6: memref<128x128xbf16, #tpu.memory_space<vmem>>, %arg7: memref<1x128xf32, #tpu.memory_space<vmem>>, %arg8: memref<8x128xf32, #tpu.memory_space<vmem>>) attributes {dimension_semantics = [#tpu.dimension_semantics<parallel>], iteration_bounds = array<i64: 1>, scalar_prefetch = 0 : i64, scratch_operands = 0 : i64, tpu.core_type = #tpu.core_type<tc>, window_params = [{transform_indices = @transform_0, window_bounds = array<i64: 8, 128>}, {pipeline_mode = #tpu.pipeline_mode<synchronous>, transform_indices = @transform_1, window_bounds = array<i64: 3, 128, 256>}, {pipeline_mode = #tpu.pipeline_mode<synchronous>, transform_indices = @transform_2, window_bounds = array<i64: 3, 1, 256>}, {pipeline_mode = #tpu.pipeline_mode<synchronous>, transform_indices = @transform_3, window_bounds = array<i64: 3, 128, 128>}, {pipeline_mode = #tpu.pipeline_mode<synchronous>, transform_indices = @transform_4, window_bounds = array<i64: 3, 1, 128>}, {pipeline_mode = #tpu.pipeline_mode<synchronous>, transform_indices = @transform_5, window_bounds = array<i64: 128, 128>}, {pipeline_mode = #tpu.pipeline_mode<synchronous>, transform_indices = @transform_6, window_bounds = array<i64: 1, 128>}, {transform_indices = @transform_7, window_bounds = array<i64: 8, 128>}]} {
    %c0 = arith.constant 0 : index
    %c0_0 = arith.constant 0 : index
    %0 = vector.load %arg1[%c0, %c0_0] : memref<8x128xf32, #tpu.memory_space<vmem>>, vector<8x128xf32>
    %1 = arith.truncf %0 : vector<8x128xf32> to vector<8x128xbf16>
    %c0_1 = arith.constant 0 : index
    %c0_2 = arith.constant 0 : index
    %c0_3 = arith.constant 0 : index
    %2 = vector.load %arg2[%c0_1, %c0_2, %c0_3] : memref<3x128x256xbf16, #tpu.memory_space<vmem>>, vector<1x128x256xbf16>
    %3 = vector.shape_cast %2 : vector<1x128x256xbf16> to vector<128x256xbf16>
    %cst = arith.constant dense<0.000000e+00> : vector<8x256xf32>
    %4 = tpu.matmul %1, %3, %cst {dimension_numbers = #tpu.dot_dimension_numbers<[1], [0], [0], [1], [0, 0, 1, 1], [], []>} : vector<8x128xbf16>, vector<128x256xbf16>, vector<8x256xf32> -> vector<8x256xf32>
    %c0_4 = arith.constant 0 : index
    %c0_5 = arith.constant 0 : index
    %c0_6 = arith.constant 0 : index
    %5 = vector.load %arg3[%c0_4, %c0_5, %c0_6] : memref<3x1x256xf32, #tpu.memory_space<vmem>>, vector<1x1x256xf32>
    %6 = vector.shape_cast %5 : vector<1x1x256xf32> to vector<1x256xf32>
    %7 = vector.broadcast %6 : vector<1x256xf32> to vector<8x256xf32>
    %8 = arith.addf %4, %7 : vector<8x256xf32>
    %cst_7 = arith.constant 1.000000e-01 : f32
    %9 = vector.broadcast %cst_7 : f32 to vector<8x256xf32>
    %10 = arith.mulf %9, %8 : vector<8x256xf32>
    %11 = arith.maximumf %8, %10 : vector<8x256xf32>
    %12 = vector.extract_strided_slice %11 {offsets = [0, 0], sizes = [8, 128], strides = [1, 1]} : vector<8x256xf32> to vector<8x128xf32>
    %13 = vector.extract_strided_slice %11 {offsets = [0, 128], sizes = [8, 128], strides = [1, 1]} : vector<8x256xf32> to vector<8x128xf32>
    %14 = arith.truncf %13 : vector<8x128xf32> to vector<8x128xbf16>
    %c0_8 = arith.constant 0 : index
    %c0_9 = arith.constant 0 : index
    %c0_10 = arith.constant 0 : index
    %15 = vector.load %arg4[%c0_8, %c0_9, %c0_10] : memref<3x128x128xbf16, #tpu.memory_space<vmem>>, vector<1x128x128xbf16>
    %16 = vector.shape_cast %15 : vector<1x128x128xbf16> to vector<128x128xbf16>
    %cst_11 = arith.constant dense<0.000000e+00> : vector<8x128xf32>
    %17 = tpu.matmul %14, %16, %cst_11 {dimension_numbers = #tpu.dot_dimension_numbers<[1], [0], [0], [1], [0, 0, 1, 1], [], []>} : vector<8x128xbf16>, vector<128x128xbf16>, vector<8x128xf32> -> vector<8x128xf32>
    %c0_12 = arith.constant 0 : index
    %c0_13 = arith.constant 0 : index
    %c0_14 = arith.constant 0 : index
    %18 = vector.load %arg5[%c0_12, %c0_13, %c0_14] : memref<3x1x128xf32, #tpu.memory_space<vmem>>, vector<1x1x128xf32>
    %19 = vector.shape_cast %18 : vector<1x1x128xf32> to vector<1x128xf32>
    %20 = vector.broadcast %19 : vector<1x128xf32> to vector<8x128xf32>
    %21 = arith.addf %17, %20 : vector<8x128xf32>
    %cst_15 = arith.constant 1.000000e-01 : f32
    %22 = vector.broadcast %cst_15 : f32 to vector<8x128xf32>
    %23 = arith.mulf %22, %21 : vector<8x128xf32>
    %24 = arith.maximumf %21, %23 : vector<8x128xf32>
    %25 = arith.addf %12, %24 : vector<8x128xf32>
    %cst_16 = arith.constant 1.000000e-01 : f32
    %26 = vector.broadcast %cst_16 : f32 to vector<8x128xf32>
    %27 = arith.mulf %26, %25 : vector<8x128xf32>
    %28 = arith.maximumf %25, %27 : vector<8x128xf32>
    %29 = arith.addf %28, %0 : vector<8x128xf32>
    %30 = arith.truncf %29 : vector<8x128xf32> to vector<8x128xbf16>
    %c1 = arith.constant 1 : index
    %c0_17 = arith.constant 0 : index
    %c0_18 = arith.constant 0 : index
    %31 = vector.load %arg2[%c1, %c0_17, %c0_18] : memref<3x128x256xbf16, #tpu.memory_space<vmem>>, vector<1x128x256xbf16>
    %32 = vector.shape_cast %31 : vector<1x128x256xbf16> to vector<128x256xbf16>
    %cst_19 = arith.constant dense<0.000000e+00> : vector<8x256xf32>
    %33 = tpu.matmul %30, %32, %cst_19 {dimension_numbers = #tpu.dot_dimension_numbers<[1], [0], [0], [1], [0, 0, 1, 1], [], []>} : vector<8x128xbf16>, vector<128x256xbf16>, vector<8x256xf32> -> vector<8x256xf32>
    %c1_20 = arith.constant 1 : index
    %c0_21 = arith.constant 0 : index
    %c0_22 = arith.constant 0 : index
    %34 = vector.load %arg3[%c1_20, %c0_21, %c0_22] : memref<3x1x256xf32, #tpu.memory_space<vmem>>, vector<1x1x256xf32>
    %35 = vector.shape_cast %34 : vector<1x1x256xf32> to vector<1x256xf32>
    %36 = vector.broadcast %35 : vector<1x256xf32> to vector<8x256xf32>
    %37 = arith.addf %33, %36 : vector<8x256xf32>
    %cst_23 = arith.constant 1.000000e-01 : f32
    %38 = vector.broadcast %cst_23 : f32 to vector<8x256xf32>
    %39 = arith.mulf %38, %37 : vector<8x256xf32>
    %40 = arith.maximumf %37, %39 : vector<8x256xf32>
    %41 = vector.extract_strided_slice %40 {offsets = [0, 0], sizes = [8, 128], strides = [1, 1]} : vector<8x256xf32> to vector<8x128xf32>
    %42 = vector.extract_strided_slice %40 {offsets = [0, 128], sizes = [8, 128], strides = [1, 1]} : vector<8x256xf32> to vector<8x128xf32>
    %43 = arith.truncf %42 : vector<8x128xf32> to vector<8x128xbf16>
    %c1_24 = arith.constant 1 : index
    %c0_25 = arith.constant 0 : index
    %c0_26 = arith.constant 0 : index
    %44 = vector.load %arg4[%c1_24, %c0_25, %c0_26] : memref<3x128x128xbf16, #tpu.memory_space<vmem>>, vector<1x128x128xbf16>
    %45 = vector.shape_cast %44 : vector<1x128x128xbf16> to vector<128x128xbf16>
    %cst_27 = arith.constant dense<0.000000e+00> : vector<8x128xf32>
    %46 = tpu.matmul %43, %45, %cst_27 {dimension_numbers = #tpu.dot_dimension_numbers<[1], [0], [0], [1], [0, 0, 1, 1], [], []>} : vector<8x128xbf16>, vector<128x128xbf16>, vector<8x128xf32> -> vector<8x128xf32>
    %c1_28 = arith.constant 1 : index
    %c0_29 = arith.constant 0 : index
    %c0_30 = arith.constant 0 : index
    %47 = vector.load %arg5[%c1_28, %c0_29, %c0_30] : memref<3x1x128xf32, #tpu.memory_space<vmem>>, vector<1x1x128xf32>
    %48 = vector.shape_cast %47 : vector<1x1x128xf32> to vector<1x128xf32>
    %49 = vector.broadcast %48 : vector<1x128xf32> to vector<8x128xf32>
    %50 = arith.addf %46, %49 : vector<8x128xf32>
    %cst_31 = arith.constant 1.000000e-01 : f32
    %51 = vector.broadcast %cst_31 : f32 to vector<8x128xf32>
    %52 = arith.mulf %51, %50 : vector<8x128xf32>
    %53 = arith.maximumf %50, %52 : vector<8x128xf32>
    %54 = arith.addf %41, %53 : vector<8x128xf32>
    %cst_32 = arith.constant 1.000000e-01 : f32
    %55 = vector.broadcast %cst_32 : f32 to vector<8x128xf32>
    %56 = arith.mulf %55, %54 : vector<8x128xf32>
    %57 = arith.maximumf %54, %56 : vector<8x128xf32>
    %58 = arith.addf %57, %29 : vector<8x128xf32>
    %59 = arith.truncf %58 : vector<8x128xf32> to vector<8x128xbf16>
    %c2 = arith.constant 2 : index
    %c0_33 = arith.constant 0 : index
    %c0_34 = arith.constant 0 : index
    %60 = vector.load %arg2[%c2, %c0_33, %c0_34] : memref<3x128x256xbf16, #tpu.memory_space<vmem>>, vector<1x128x256xbf16>
    %61 = vector.shape_cast %60 : vector<1x128x256xbf16> to vector<128x256xbf16>
    %cst_35 = arith.constant dense<0.000000e+00> : vector<8x256xf32>
    %62 = tpu.matmul %59, %61, %cst_35 {dimension_numbers = #tpu.dot_dimension_numbers<[1], [0], [0], [1], [0, 0, 1, 1], [], []>} : vector<8x128xbf16>, vector<128x256xbf16>, vector<8x256xf32> -> vector<8x256xf32>
    %c2_36 = arith.constant 2 : index
    %c0_37 = arith.constant 0 : index
    %c0_38 = arith.constant 0 : index
    %63 = vector.load %arg3[%c2_36, %c0_37, %c0_38] : memref<3x1x256xf32, #tpu.memory_space<vmem>>, vector<1x1x256xf32>
    %64 = vector.shape_cast %63 : vector<1x1x256xf32> to vector<1x256xf32>
    %65 = vector.broadcast %64 : vector<1x256xf32> to vector<8x256xf32>
    %66 = arith.addf %62, %65 : vector<8x256xf32>
    %cst_39 = arith.constant 1.000000e-01 : f32
    %67 = vector.broadcast %cst_39 : f32 to vector<8x256xf32>
    %68 = arith.mulf %67, %66 : vector<8x256xf32>
    %69 = arith.maximumf %66, %68 : vector<8x256xf32>
    %70 = vector.extract_strided_slice %69 {offsets = [0, 0], sizes = [8, 128], strides = [1, 1]} : vector<8x256xf32> to vector<8x128xf32>
    %71 = vector.extract_strided_slice %69 {offsets = [0, 128], sizes = [8, 128], strides = [1, 1]} : vector<8x256xf32> to vector<8x128xf32>
    %72 = arith.truncf %71 : vector<8x128xf32> to vector<8x128xbf16>
    %c2_40 = arith.constant 2 : index
    %c0_41 = arith.constant 0 : index
    %c0_42 = arith.constant 0 : index
    %73 = vector.load %arg4[%c2_40, %c0_41, %c0_42] : memref<3x128x128xbf16, #tpu.memory_space<vmem>>, vector<1x128x128xbf16>
    %74 = vector.shape_cast %73 : vector<1x128x128xbf16> to vector<128x128xbf16>
    %cst_43 = arith.constant dense<0.000000e+00> : vector<8x128xf32>
    %75 = tpu.matmul %72, %74, %cst_43 {dimension_numbers = #tpu.dot_dimension_numbers<[1], [0], [0], [1], [0, 0, 1, 1], [], []>} : vector<8x128xbf16>, vector<128x128xbf16>, vector<8x128xf32> -> vector<8x128xf32>
    %c2_44 = arith.constant 2 : index
    %c0_45 = arith.constant 0 : index
    %c0_46 = arith.constant 0 : index
    %76 = vector.load %arg5[%c2_44, %c0_45, %c0_46] : memref<3x1x128xf32, #tpu.memory_space<vmem>>, vector<1x1x128xf32>
    %77 = vector.shape_cast %76 : vector<1x1x128xf32> to vector<1x128xf32>
    %78 = vector.broadcast %77 : vector<1x128xf32> to vector<8x128xf32>
    %79 = arith.addf %75, %78 : vector<8x128xf32>
    %cst_47 = arith.constant 1.000000e-01 : f32
    %80 = vector.broadcast %cst_47 : f32 to vector<8x128xf32>
    %81 = arith.mulf %80, %79 : vector<8x128xf32>
    %82 = arith.maximumf %79, %81 : vector<8x128xf32>
    %83 = arith.addf %70, %82 : vector<8x128xf32>
    %cst_48 = arith.constant 1.000000e-01 : f32
    %84 = vector.broadcast %cst_48 : f32 to vector<8x128xf32>
    %85 = arith.mulf %84, %83 : vector<8x128xf32>
    %86 = arith.maximumf %83, %85 : vector<8x128xf32>
    %87 = arith.addf %86, %58 : vector<8x128xf32>
    %88 = arith.truncf %87 : vector<8x128xf32> to vector<8x128xbf16>
    %c0_49 = arith.constant 0 : index
    %c0_50 = arith.constant 0 : index
    %89 = vector.load %arg6[%c0_49, %c0_50] : memref<128x128xbf16, #tpu.memory_space<vmem>>, vector<128x128xbf16>
    %cst_51 = arith.constant dense<0.000000e+00> : vector<8x128xf32>
    %90 = tpu.matmul %88, %89, %cst_51 {dimension_numbers = #tpu.dot_dimension_numbers<[1], [0], [0], [1], [0, 0, 1, 1], [], []>} : vector<8x128xbf16>, vector<128x128xbf16>, vector<8x128xf32> -> vector<8x128xf32>
    %c0_52 = arith.constant 0 : index
    %c0_53 = arith.constant 0 : index
    %91 = vector.load %arg7[%c0_52, %c0_53] : memref<1x128xf32, #tpu.memory_space<vmem>>, vector<1x128xf32>
    %92 = vector.broadcast %91 : vector<1x128xf32> to vector<8x128xf32>
    %93 = arith.addf %90, %92 : vector<8x128xf32>
    %94 = arith.negf %93 : vector<8x128xf32>
    %95 = math.exp %94 : vector<8x128xf32>
    %cst_54 = arith.constant 1.000000e+00 : f32
    %96 = vector.broadcast %cst_54 : f32 to vector<8x128xf32>
    %97 = arith.addf %96, %95 : vector<8x128xf32>
    %98 = arith.divf %96, %97 : vector<8x128xf32>
    %c0_55 = arith.constant 0 : index
    %c0_56 = arith.constant 0 : index
    %99 = vector.load %arg8[%c0_55, %c0_56] : memref<8x128xf32, #tpu.memory_space<vmem>>, vector<8x128xf32>
    tpu.vector_store %arg8[%c0_55, %c0_56], %98 {strides = array<i32>} : memref<8x128xf32, #tpu.memory_space<vmem>>, vector<8x128xf32>,
    return
  }
  func.func @transform_0(%arg0: i32) -> (i32, i32) {
    %c0_i32 = arith.constant 0 : i32
    %c0_i32_0 = arith.constant 0 : i32
    return %arg0, %c0_i32 : i32, i32
  }
  func.func @transform_1(%arg0: i32) -> (i32, i32, i32) {
    %c0_i32 = arith.constant 0 : i32
    %c0_i32_0 = arith.constant 0 : i32
    %c0_i32_1 = arith.constant 0 : i32
    %c0_i32_2 = arith.constant 0 : i32
    return %c0_i32, %c0_i32_0, %c0_i32_1 : i32, i32, i32
  }
  func.func @transform_2(%arg0: i32) -> (i32, i32, i32) {
    %c0_i32 = arith.constant 0 : i32
    %c0_i32_0 = arith.constant 0 : i32
    %c0_i32_1 = arith.constant 0 : i32
    %c0_i32_2 = arith.constant 0 : i32
    return %c0_i32, %c0_i32_0, %c0_i32_1 : i32, i32, i32
  }
  func.func @transform_3(%arg0: i32) -> (i32, i32, i32) {
    %c0_i32 = arith.constant 0 : i32
    %c0_i32_0 = arith.constant 0 : i32
    %c0_i32_1 = arith.constant 0 : i32
    %c0_i32_2 = arith.constant 0 : i32
    return %c0_i32, %c0_i32_0, %c0_i32_1 : i32, i32, i32
  }
  func.func @transform_4(%arg0: i32) -> (i32, i32, i32) {
    %c0_i32 = arith.constant 0 : i32
    %c0_i32_0 = arith.constant 0 : i32
    %c0_i32_1 = arith.constant 0 : i32
    %c0_i32_2 = arith.constant 0 : i32
    return %c0_i32, %c0_i32_0, %c0_i32_1 : i32, i32, i32
  }
  func.func @transform_5(%arg0: i32) -> (i32, i32) {
    %c0_i32 = arith.constant 0 : i32
    %c0_i32_0 = arith.constant 0 : i32
    %c0_i32_1 = arith.constant 0 : i32
    return %c0_i32, %c0_i32_0 : i32, i32
  }
  func.func @transform_6(%arg0: i32) -> (i32, i32) {
    %c0_i32 = arith.constant 0 : i32
    %c0_i32_0 = arith.constant 0 : i32
    %c0_i32_1 = arith.constant 0 : i32
    return %c0_i32, %c0_i32_0 : i32, i32
  }
  func.func @transform_7(%arg0: i32) -> (i32, i32) {
    %c0_i32 = arith.constant 0 : i32
    %c0_i32_0 = arith.constant 0 : i32
    return %arg0, %c0_i32 : i32, i32
  }
}

</mosaic_0001>

<bundles_post_ra>
// kernel: dex_evaluator_forward.1
= control target key start
LH: loop header
LB: loop body
LE: loop exit
PB: predicated region body
PF: predicated region fallthrough
CT: control target
= control target key end

     0   :  { %12 = vsyncpa [#allocation3], 0  ;;  %s1593_s0 = inlined_call_operand.vmem [shape: f32[8,128], index: 0, kind: input, shape index: {}]   ;;  %s1594_s1 = inlined_call_operand.hbm [shape: bf16[3,128,256], index: 1, kind: input, shape index: {}]   ;;  %s1595_s2 = inlined_call_operand.vmem [shape: f32[3,1,256], index: 2, kind: input, shape index: {}]   ;;  %s1596_s3 = inlined_call_operand.hbm [shape: bf16[3,128,128], index: 3, kind: input, shape index: {}]   ;;  %s1597_s4 = inlined_call_operand.vmem [shape: f32[3,1,128], index: 4, kind: input, shape index: {}]   ;;  %s1598_s5 = inlined_call_operand.hbm [shape: bf16[128,128], index: 5, kind: input, shape index: {}]   ;;  %s1599_s6 = inlined_call_operand.vmem [shape: f32[1,128], index: 6, kind: input, shape index: {}]   ;;  %s1600_s7 = inlined_call_operand.vmem [shape: f32[8,128], index: 7, kind: output, shape index: {}]  }
   0x1   :  { %13 = vsyncpa [#allocation5], 0  ;;  %s1411_s24 = smov [#allocation4]   ;;  %s1341_s28 = scalar_lea.hbm %s1596_s3, 3072 }
   0x2   :  { %s35_s25 = sshll.u32 %s1411_s24, 4  ;;  %p1342_p0 = scmp.ne.s32.totalorder %s1596_s3, %s1341_s28  ;;  %s36_s25 = int_to_ptr.vmem [resolvable:$true] %s35_s25 }
   0x3   :  { %p1345_p1 = scmp.lt.u32.totalorder %s1341_s28, %s1596_s3 }
   0x5   :  { %p1347_p2 = pnand %p1345_p1, %p1342_p0 }
   0x7   :  { %1350 = shalt.err (!%p1347_p2)
}
   0x8   :  { %s1351_s10 = scalar_lea.vmem %s36_s25, 3072  ;;  %p1356_p4 = scmp.lt.s32.totalorder %s36_s25, %s36_s25 }
   0x9   :  { %p1352_p3 = scmp.ne.s32.totalorder %s36_s25, %s1351_s10  ;;  %p1357_p5 = scmp.lt.s32.totalorder %s1351_s10, %s1351_s10 }
   0xb   :  { %p1358_p6 = por %p1357_p5, %p1356_p4 }
   0xd   :  { %p1359_p7 = pnand %p1358_p6, %p1352_p3 }
   0xf   :  { %1362 = shalt.err (!%p1359_p7)
}
  0x10   :  { %s1412_s11 = smov 64   ;;  %s1413_s12 = smov 4  }
  0x11   :  { %41 = dma.hbm_to_vmem [thread:$0]  %s1596_s3, 3072, %s36_s25, [#allocation5], %s1412_s11, %s1412_s11, %s1413_s12  }
  0x12   :  { %s1414_s15 = smov [#allocation2]   ;;  %s1363_s19 = scalar_lea.hbm %s1594_s1, 6144 }
  0x13   :  { %s21_s16 = sshll.u32 %s1414_s15, 4  ;;  %p1364_p8 = scmp.ne.s32.totalorder %s1594_s1, %s1363_s19  ;;  %s22_s16 = int_to_ptr.vmem [resolvable:$true] %s21_s16 }
  0x14   :  { %p1367_p9 = scmp.lt.u32.totalorder %s1363_s19, %s1594_s1 }
  0x16   :  { %p1369_p10 = pnand %p1367_p9, %p1364_p8 }
  0x18   :  { %1372 = shalt.err (!%p1369_p10)
}
  0x19   :  { %s1373_s24 = scalar_lea.vmem %s22_s16, 6144  ;;  %p1378_p12 = scmp.lt.s32.totalorder %s22_s16, %s22_s16 }
  0x1a   :  { %p1374_p11 = scmp.ne.s32.totalorder %s22_s16, %s1373_s24  ;;  %p1379_p13 = scmp.lt.s32.totalorder %s1373_s24, %s1373_s24 }
  0x1c   :  { %p1380_p0 = por %p1379_p13, %p1378_p12 }
  0x1e   :  { %p1381_p1 = pnand %p1380_p0, %p1374_p11 }
  0x20   :  { %1384 = shalt.err (!%p1381_p1)
}
  0x21   :  { %s1415_s3 = smov 128   ;;  %s1416_s25 = smov 8  }
  0x22   :  { %27 = dma.hbm_to_vmem [thread:$0]  %s1594_s1, 6144, %s22_s16, [#allocation3], %s1415_s3, %s1415_s3, %s1416_s25  }
  0x23   :  { %s1417_s28 = smov [#allocation6]   ;;  %s1385_s9 = scalar_lea.hbm %s1598_s5, 1024 }
  0x24   :  { %s49_s29 = sshll.u32 %s1417_s28, 4  ;;  %p1386_p2 = scmp.ne.s32.totalorder %s1598_s5, %s1385_s9  ;;  %s50_s29 = int_to_ptr.vmem [resolvable:$true] %s49_s29 }
  0x25   :  { %p1389_p3 = scmp.lt.u32.totalorder %s1385_s9, %s1598_s5 }
  0x27   :  { %p1391_p4 = pnand %p1389_p3, %p1386_p2 }
  0x29   :  { %1394 = shalt.err (!%p1391_p4)
}
  0x2a   :  { %s1395_s17 = scalar_lea.vmem %s50_s29, 1024  ;;  %p1400_p6 = scmp.lt.s32.totalorder %s50_s29, %s50_s29 }
  0x2b   :  { %p1396_p5 = scmp.ne.s32.totalorder %s50_s29, %s1395_s17  ;;  %p1401_p7 = scmp.lt.s32.totalorder %s1395_s17, %s1395_s17 }
  0x2d   :  { %p1402_p8 = por %p1401_p7, %p1400_p6 }
  0x2f   :  { %p1403_p9 = pnand %p1402_p8, %p1396_p5 }
  0x31   :  { %1406 = shalt.err (!%p1403_p9)
}
  0x32   :  { %55 = dma.hbm_to_vmem [thread:$0]  %s1598_s5, 1024, %s50_s29, [#allocation5], %s1412_s11, %s1412_s11, %s1413_s12  }
  0x33   :  { %1407 = dma.done.wait [#allocation3], 6144  }
  0x34   :  { %1408 = vsyncadd [#allocation3], 4294961152 }
  0x35   :  { %1409 = dma.done.wait [#allocation5], 4096  }
  0x36   :  { %1410 = vsyncadd [#allocation5], 4294963200  ;;  %v1418_v0 = vmov 0   ;;  %v1419_v1 = vmov 0.0   ;;  %v1233_v2 = vld [vmem:[#allocation2 + $0x4] ss:$8 sps:$4 sm:$0xff]   ;;  %v88_v36 = vlaneseq }
  0x37   :  { %210 = vmatprep.mubr.bf16.mxu0 %v1418_v0  ;;  %1143 = vmatprep.subr.bf16.mxu1 %v1419_v1  ;;  %v1235_v3 = vld [vmem:[#allocation2] ss:$8 sps:$4 sm:$0xff]   ;;  %v1236_v4 = vld [vmem:[#allocation2 + $0x14] ss:$8 sps:$4 sm:$0xff]   ;;  %v1238_v5 = vld [vmem:[#allocation2 + $0x10] ss:$8 sps:$4 sm:$0xff]  }
  0x38   :  { %178 = vmatprep.subr.bf16.mxu0 %v1233_v2  ;;  %v1239_v6 = vld [vmem:[#allocation2 + $0x24] ss:$8 sps:$4 sm:$0xff]   ;;  %v1241_v7 = vld [vmem:[#allocation2 + $0x20] ss:$8 sps:$4 sm:$0xff]   ;;  %v1242_v8 = vld [vmem:[#allocation2 + $0x34] ss:$8 sps:$4 sm:$0xff]  }
  0x39   :  { %179 = vmatpush1.bf16.msra.mxu0 %v1235_v3  ;;  %v1244_v9 = vld [vmem:[#allocation2 + $0x30] ss:$8 sps:$4 sm:$0xff]   ;;  %v1257_v10 = vld [vmem:[#allocation4] sm:$0xff]   ;;  %v1258_v12 = vld [vmem:[#allocation4 + $0x8] sm:$0xff]   ;;  %vm1420_vm0 = vmmov 0   ;;  %v89_v37 = vshrl.u32 %v88_v36, 7 }
  0x3a   :  { %180 = vmatprep.subr.bf16.mxu0 %v1236_v4  ;;  %v1245_v11 = vld [vmem:[#allocation2 + $0x44] ss:$8 sps:$4 sm:$0xff]   ;;  %1144 = vmatpush3.bf16.msra.mxu1 %v1257_v10  ;;  %v1247_v13 = vld [vmem:[#allocation2 + $0x40] ss:$8 sps:$4 sm:$0xff]   ;;  %v1248_v14 = vld [vmem:[#allocation2 + $0x54] ss:$8 sps:$4 sm:$0xff]  }
  0x3b   :  { %1145 = vmatprep.subr.bf16.mxu1 %v1419_v1  ;;  %v1250_v15 = vld [vmem:[#allocation2 + $0x50] ss:$8 sps:$4 sm:$0xff]   ;;  %v1251_v17 = vld [vmem:[#allocation2 + $0x64] ss:$8 sps:$4 sm:$0xff]   ;;  %v1253_v19 = vld [vmem:[#allocation2 + $0x60] ss:$8 sps:$4 sm:$0xff]   ;;  %1159 = vmatprep.mubr.msk.bf16.mxu1 %vm1420_vm0, %v1419_v1 }
  0x3c   :  { %v1259_v16 = vld [vmem:[#allocation4 + $0x10] sm:$0xff]   ;;  %v1260_v18 = vld [vmem:[#allocation4 + $0x18] sm:$0xff]   ;;  %v1261_v21 = vld [vmem:[#allocation4 + $0x20] sm:$0xff]   ;;  %v1523_v38 = vsub.s32 1, %v89_v37  ;;  %v1537_v63 = vsub.s32 0, %v89_v37 }
  0x3d   :  { %181 = vmatpush1.bf16.msra.mxu0 %v1238_v5  ;;  %v1254_v20 = vld [vmem:[#allocation2 + $0x74] ss:$8 sps:$4 sm:$0xff]   ;;  %v1256_v22 = vld [vmem:[#allocation2 + $0x70] ss:$8 sps:$4 sm:$0xff]   ;;  %v1511_v23 = vld [vmem:[%s1593_s0] sm:$0xff] }
  0x3e   :  { %182 = vmatprep.subr.bf16.mxu0 %v1239_v6  ;;  %1146 = vmatpush3.bf16.msra.mxu1 %v1258_v12  ;;  %v1262_v24 = vld [vmem:[#allocation4 + $0x28] sm:$0xff]   ;;  %v69_v25 = vpack.c.bf16 %v1511_v23, %v1511_v23  ;;  %v1263_v26 = vld [vmem:[#allocation4 + $0x30] sm:$0xff]   ;;  %v1264_v27 = vld [vmem:[#allocation4 + $0x38] sm:$0xff]  }
  0x3f   :  { %1147 = vmatprep.subr.bf16.mxu1 %v1419_v1  ;;  %v1265_v28 = vld [vmem:[#allocation2 + $0x80] ss:$8 sps:$4 sm:$0xff]   ;;  %v1267_v29 = vld [vmem:[#allocation2 + $0x84] ss:$8 sps:$4 sm:$0xff]   ;;  %v1270_v30 = vld [vmem:[#allocation2 + $0x94] ss:$8 sps:$4 sm:$0xff]  }
  0x40   :  { %v1268_v31 = vld [vmem:[#allocation2 + $0x90] ss:$8 sps:$4 sm:$0xff]   ;;  %v1273_v32 = vld [vmem:[#allocation2 + $0xa4] ss:$8 sps:$4 sm:$0xff]   ;;  %v1271_v33 = vld [vmem:[#allocation2 + $0xa0] ss:$8 sps:$4 sm:$0xff]  }
  0x41   :  { %183 = vmatpush1.bf16.msra.mxu0 %v1241_v7  ;;  %v1276_v34 = vld [vmem:[#allocation2 + $0xb4] ss:$8 sps:$4 sm:$0xff]   ;;  %v1274_v35 = vld [vmem:[#allocation2 + $0xb0] ss:$8 sps:$4 sm:$0xff]   ;;  %v86_v39 = vld [vmem:[%s1595_s2] sm:$0x3] }
  0x42   :  { %184 = vmatprep.subr.bf16.mxu0 %v1242_v8  ;;  %1148 = vmatpush3.bf16.msra.mxu1 %v1259_v16  ;;  %v95_v40 = vrot.slane %v86_v39, %v1523_v38  ;;  %v1279_v49 = vld [vmem:[#allocation2 + $0xc4] ss:$8 sps:$4 sm:$0xff]   ;;  %v1277_v50 = vld [vmem:[#allocation2 + $0xc0] ss:$8 sps:$4 sm:$0xff]   ;;  %v1282_v51 = vld [vmem:[#allocation2 + $0xd4] ss:$8 sps:$4 sm:$0xff]   ;;  %v91_v2 = vrot.slane %v86_v39, %v1537_v63 }
  0x43   :  { %1149 = vmatprep.subr.bf16.mxu1 %v1419_v1  ;;  %v1280_v52 = vld [vmem:[#allocation2 + $0xd0] ss:$8 sps:$4 sm:$0xff]   ;;  %v1285_v53 = vld [vmem:[#allocation2 + $0xe4] ss:$8 sps:$4 sm:$0xff]   ;;  %v1283_v54 = vld [vmem:[#allocation2 + $0xe0] ss:$8 sps:$4 sm:$0xff]  }
  0x44   :  { %v1288_v55 = vld [vmem:[#allocation2 + $0xf4] ss:$8 sps:$4 sm:$0xff]   ;;  %v1286_v56 = vld [vmem:[#allocation2 + $0xf0] ss:$8 sps:$4 sm:$0xff]   ;;  %v1289_v57 = vld [vmem:[#allocation4 + $0x40] sm:$0xff]  }
  0x45   :  { %185 = vmatpush1.bf16.msra.mxu0 %v1244_v9  ;;  %v1290_v58 = vld [vmem:[#allocation4 + $0x48] sm:$0xff]   ;;  %v1291_v59 = vld [vmem:[#allocation4 + $0x50] sm:$0xff]   ;;  %v1292_v60 = vld [vmem:[#allocation4 + $0x58] sm:$0xff]  }
  0x46   :  { %186 = vmatprep.subr.bf16.mxu0 %v1245_v11  ;;  %1150 = vmatpush3.bf16.msra.mxu1 %v1260_v18  ;;  %v1293_v61 = vld [vmem:[#allocation4 + $0x60] sm:$0xff]   ;;  %v1294_v62 = vld [vmem:[#allocation4 + $0x68] sm:$0xff]  }
  0x47   :  { %1151 = vmatprep.subr.bf16.mxu1 %v1419_v1  ;;  %v1034_v4 = vld [vmem:[%s1597_s4] ss:$0 sm:$0xff]  ;;  %v1311_v39 = vld [vmem:[#allocation2 + $0x144] ss:$8 sps:$4 sm:$0xff]  }
  0x49   :  { %187 = vmatpush1.bf16.msra.mxu0 %v1247_v13 }
  0x4a   :  { %188 = vmatprep.subr.bf16.mxu0 %v1248_v14  ;;  %1152 = vmatpush3.bf16.msra.mxu1 %v1261_v21  ;;  %v1297_v21 = vld [vmem:[#allocation2 + $0x100] ss:$8 sps:$4 sm:$0xff]  }
  0x4b   :  { %1153 = vmatprep.subr.bf16.mxu1 %v1419_v1 }
  0x4d   :  { %189 = vmatpush1.bf16.msra.mxu0 %v1250_v15 }
  0x4e   :  { %190 = vmatprep.subr.bf16.mxu0 %v1251_v17  ;;  %1154 = vmatpush3.bf16.msra.mxu1 %v1262_v24  ;;  %v1302_v24 = vld [vmem:[#allocation2 + $0x114] ss:$8 sps:$4 sm:$0xff]  }
  0x4f   :  { %1155 = vmatprep.subr.bf16.mxu1 %v1419_v1 }
  0x51   :  { %191 = vmatpush1.bf16.msra.mxu0 %v1253_v19  ;;  %v1295_v19 = vld [vmem:[#allocation4 + $0x70] sm:$0xff]  }
  0x52   :  { %192 = vmatprep.subr.bf16.mxu0 %v1254_v20  ;;  %1156 = vmatpush3.bf16.msra.mxu1 %v1263_v26  ;;  %v1296_v20 = vld [vmem:[#allocation4 + $0x78] sm:$0xff]   ;;  %v1303_v26 = vld [vmem:[#allocation2 + $0x120] ss:$8 sps:$4 sm:$0xff]  }
  0x53   :  { %1157 = vmatprep.subr.bf16.mxu1 %v1419_v1 }
  0x55   :  { %193 = vmatpush1.bf16.msra.mxu0 %v1256_v22  ;;  %v1299_v22 = vld [vmem:[#allocation2 + $0x104] ss:$8 sps:$4 sm:$0xff]  }
  0x56   :  { %1158 = vmatpush3.bf16.msra.mxu1 %v1264_v27  ;;  %452 = vmatprep.subr.bf16.mxu0 %v1267_v29  ;;  %v1306_v27 = vld [vmem:[#allocation2 + $0x130] ss:$8 sps:$4 sm:$0xff]  }
  0x57   :  { %1163 = vmatprep.subr.bf16.mxu1 %v1419_v1 }
  0x58   :  { %211 = vmatmul.mubr.bf16.vlgmr.msra.gmra.mrb[0].mxu0 %v69_v25  ;;  %v1305_v25 = vld [vmem:[#allocation2 + $0x124] ss:$8 sps:$4 sm:$0xff]  }
  0x59   :  { %484 = vmatprep.mubr.bf16.mxu0 %v1418_v0  ;;  %453 = vmatpush1.bf16.msra.mxu0 %v1265_v28  ;;  %v1043_v28 = vld [vmem:[%s1595_s2 + $0x2] sm:$0x3] }
  0x5a   :  { %454 = vmatprep.subr.bf16.mxu0 %v1270_v30  ;;  %v369_v29 = vrot.slane %v1043_v28, %v1523_v38 }
  0x5d   :  { %455 = vmatpush1.bf16.msra.mxu0 %v1268_v31 }
  0x5e   :  { %456 = vmatprep.subr.bf16.mxu0 %v1273_v32 }
  0x61   :  { %457 = vmatpush1.bf16.msra.mxu0 %v1271_v33 }
  0x62   :  { %458 = vmatprep.subr.bf16.mxu0 %v1276_v34 }
  0x65   :  { %459 = vmatpush1.bf16.msra.mxu0 %v1274_v35 }
  0x66   :  { %460 = vmatprep.subr.bf16.mxu0 %v1279_v49  ;;  %v1323_v49 = vld [vmem:[#allocation4 + $0x90] sm:$0xff]  }
  0x69   :  { %461 = vmatpush1.bf16.msra.mxu0 %v1277_v50  ;;  %v1324_v50 = vld [vmem:[#allocation4 + $0x98] sm:$0xff]  }
  0x6a   :  { %462 = vmatprep.subr.bf16.mxu0 %v1282_v51  ;;  %v1325_v51 = vld [vmem:[#allocation4 + $0xa0] sm:$0xff]  }
  0x6d   :  { %463 = vmatpush1.bf16.msra.mxu0 %v1280_v52  ;;  %v1326_v52 = vld [vmem:[#allocation4 + $0xa8] sm:$0xff]  }
  0x6e   :  { %464 = vmatprep.subr.bf16.mxu0 %v1285_v53  ;;  %v365_v53 = vrot.slane %v1043_v28, %v1537_v63 }
  0x71   :  { %465 = vmatpush1.bf16.msra.mxu0 %v1283_v54 }
  0x72   :  { %466 = vmatprep.subr.bf16.mxu0 %v1288_v55  ;;  %v1061_v55 = vld [vmem:[%s1597_s4 + $0x1] ss:$0 sm:$0xff] }
  0x75   :  { %467 = vmatpush1.bf16.msra.mxu0 %v1286_v56 }
  0x76   :  { %728 = vmatprep.subr.bf16.mxu0 %v1299_v22 }
 0x12b   :  { %v212_v41 = vpop.f32.mrb[0].mxu0 }
 0x12c   :  { %v214_v42 = vpop.f32.mrb[1].mxu0  ;;  %v213_v3 = vadd.f32 %v212_v41, %v91_v2  ;;  %v1314_v41 = vld [vmem:[#allocation2 + $0x154] ss:$8 sps:$4 sm:$0xff]  }
 0x12d   :  { %v215_v43 = vadd.f32 %v214_v42, %v95_v40  ;;  %v216_v44 = vpop.f32.mrb[2].mxu0  ;;  %v1309_v40 = vld [vmem:[#allocation2 + $0x140] ss:$8 sps:$4 sm:$0xff]   ;;  %v1312_v42 = vld [vmem:[#allocation2 + $0x150] ss:$8 sps:$4 sm:$0xff]  }
 0x12e   :  { %v217_v45 = vpop.f32.mrb[3].mxu0  ;;  %v219_v6 = vmul.f32 0.1, %v213_v3  ;;  %v1315_v44 = vld [vmem:[#allocation2 + $0x160] ss:$8 sps:$4 sm:$0xff]  }
 0x12f   :  { %v220_v46 = vmul.f32 0.1, %v215_v43  ;;  %v1320_v45 = vld [vmem:[#allocation2 + $0x174] ss:$8 sps:$4 sm:$0xff]  }
 0x130   :  { %v221_v12 = vmax.f32 %v213_v3, %v219_v6 }
 0x131   :  { %v222_v47 = vmax.f32 %v215_v43, %v220_v46  ;;  %v1317_v43 = vld [vmem:[#allocation2 + $0x164] ss:$8 sps:$4 sm:$0xff]   ;;  %v1318_v46 = vld [vmem:[#allocation2 + $0x170] ss:$8 sps:$4 sm:$0xff]  }
 0x133   :  { %v223_v48 = vpack.c.bf16 %v222_v47, %v222_v47  ;;  %v1321_v47 = vld [vmem:[#allocation4 + $0x80] sm:$0xff]  }
 0x135   :  { %1160 = vmatmul.mubr.bf16.vlgmr.msra.gmra.mrb[0].mxu1 %v223_v48  ;;  %v1322_v48 = vld [vmem:[#allocation4 + $0x88] sm:$0xff]  }
 0x136   :  { %1179 = vmatprep.mubr.msk.bf16.mxu1 %vm1420_vm0, %v1419_v1  ;;  %1164 = vmatpush3.bf16.msra.mxu1 %v1289_v57 }
 0x137   :  { %1165 = vmatprep.subr.bf16.mxu1 %v1419_v1 }
 0x13a   :  { %1166 = vmatpush3.bf16.msra.mxu1 %v1290_v58 }
 0x13b   :  { %1167 = vmatprep.subr.bf16.mxu1 %v1419_v1 }
 0x13e   :  { %1168 = vmatpush3.bf16.msra.mxu1 %v1291_v59 }
 0x13f   :  { %1169 = vmatprep.subr.bf16.mxu1 %v1419_v1 }
 0x142   :  { %1170 = vmatpush3.bf16.msra.mxu1 %v1292_v60 }
 0x143   :  { %1171 = vmatprep.subr.bf16.mxu1 %v1419_v1 }
 0x146   :  { %1172 = vmatpush3.bf16.msra.mxu1 %v1293_v61 }
 0x147   :  { %1173 = vmatprep.subr.bf16.mxu1 %v1419_v1 }
 0x14a   :  { %1174 = vmatpush3.bf16.msra.mxu1 %v1294_v62 }
 0x14b   :  { %1175 = vmatprep.subr.bf16.mxu1 %v1419_v1 }
 0x14e   :  { %1176 = vmatpush3.bf16.msra.mxu1 %v1295_v19 }
 0x14f   :  { %1177 = vmatprep.subr.bf16.mxu1 %v1419_v1 }
 0x152   :  { %1178 = vmatpush3.bf16.msra.mxu1 %v1296_v20 }
 0x153   :  { %1183 = vmatprep.subr.bf16.mxu1 %v1419_v1 }
 0x208   :  { %v329_v5 = vpop.f32.mrb[0].mxu1 }
 0x209   :  { %v330_v7 = vadd.f32 %v1034_v4, %v329_v5  ;;  %v1161_v8 = vpop.f32.mrb[1].mxu1 }
 0x20a   :  { %v332_v9 = vpop.f32.mrb[2].mxu1 }
 0x20b   :  { %v335_v10 = vmul.f32 0.1, %v330_v7  ;;  %v1162_v11 = vpop.f32.mrb[3].mxu1  ;;  %v1327_v9 = vld [vmem:[#allocation4 + $0xb0] sm:$0xff]  }
 0x20c   :  { %v1329_v11 = vld [vmem:[#allocation6] sm:$0xff]  }
 0x20d   :  { %v336_v13 = vmax.f32 %v330_v7, %v335_v10  ;;  %v1328_v10 = vld [vmem:[#allocation4 + $0xb8] sm:$0xff]  }
 0x20f   :  { %v337_v14 = vadd.f32 %v336_v13, %v221_v12  ;;  %v1330_v12 = vld [vmem:[#allocation6 + $0x8] sm:$0xff]   ;;  %v1331_v13 = vld [vmem:[#allocation6 + $0x10] sm:$0xff]  }
 0x211   :  { %v338_v15 = vmul.f32 0.1, %v337_v14 }
 0x213   :  { %v339_v16 = vmax.f32 %v337_v14, %v338_v15  ;;  %v1332_v14 = vld [vmem:[#allocation6 + $0x18] sm:$0xff]   ;;  %v1070_v15 = vld [vmem:[%s1595_s2 + $0x4] sm:$0x3] }
 0x215   :  { %v1544_v17 = vadd.f32 %v339_v16, %v1511_v23  ;;  %v1300_v23 = vld [vmem:[#allocation2 + $0x110] ss:$8 sps:$4 sm:$0xff]   ;;  %v645_v16 = vrot.slane %v1070_v15, %v1523_v38 }
 0x216   :  { %v1336_v38 = vld [vmem:[#allocation6 + $0x38] sm:$0xff]  }
 0x217   :  { %v341_v18 = vpack.c.bf16 %v1544_v17, %v1544_v17 }
 0x219   :  { %485 = vmatmul.mubr.bf16.vlgmr.msra.gmra.mrb[4].mxu0 %v341_v18 }
 0x21a   :  { %760 = vmatprep.mubr.bf16.mxu0 %v1418_v0  ;;  %729 = vmatpush1.bf16.msra.mxu0 %v1297_v21  ;;  %v1308_v0 = vld [vmem:[#allocation2 + $0x134] ss:$8 sps:$4 sm:$0xff]  }
 0x21b   :  { %730 = vmatprep.subr.bf16.mxu0 %v1302_v24 }
 0x21e   :  { %731 = vmatpush1.bf16.msra.mxu0 %v1300_v23 }
 0x21f   :  { %732 = vmatprep.subr.bf16.mxu0 %v1305_v25  ;;  %v1333_v25 = vld [vmem:[#allocation6 + $0x20] sm:$0xff]  }
 0x222   :  { %733 = vmatpush1.bf16.msra.mxu0 %v1303_v26  ;;  %v1334_v26 = vld [vmem:[#allocation6 + $0x28] sm:$0xff]  }
 0x223   :  { %734 = vmatprep.subr.bf16.mxu0 %v1308_v0  ;;  %v1335_v0 = vld [vmem:[#allocation6 + $0x30] sm:$0xff]  }
 0x226   :  { %735 = vmatpush1.bf16.msra.mxu0 %v1306_v27  ;;  %v641_v27 = vrot.slane %v1070_v15, %v1537_v63  ;;  %v1097_v63 = vld [vmem:[%s1599_s6] ss:$0 sm:$0xff] }
 0x227   :  { %736 = vmatprep.subr.bf16.mxu0 %v1311_v39 }
 0x22a   :  { %737 = vmatpush1.bf16.msra.mxu0 %v1309_v40 }
 0x22b   :  { %738 = vmatprep.subr.bf16.mxu0 %v1314_v41 }
 0x22e   :  { %739 = vmatpush1.bf16.msra.mxu0 %v1312_v42 }
 0x22f   :  { %740 = vmatprep.subr.bf16.mxu0 %v1317_v43 }
 0x232   :  { %741 = vmatpush1.bf16.msra.mxu0 %v1315_v44 }
 0x233   :  { %742 = vmatprep.subr.bf16.mxu0 %v1320_v45 }
 0x236   :  { %743 = vmatpush1.bf16.msra.mxu0 %v1318_v46 }
 0x237   :  { %1203 = vmatprep.subr.bf16.mxu0 %v1419_v1 }
 0x2ec   :  { %v486_v30 = vpop.f32.mrb[4].mxu0 }
 0x2ed   :  { %v488_v31 = vpop.f32.mrb[5].mxu0  ;;  %v487_v54 = vadd.f32 %v486_v30, %v365_v53 }
 0x2ee   :  { %v489_v32 = vadd.f32 %v488_v31, %v369_v29  ;;  %v490_v33 = vpop.f32.mrb[6].mxu0  ;;  %v1088_v29 = vld [vmem:[%s1597_s4 + $0x2] ss:$0 sm:$0xff] }
 0x2ef   :  { %v491_v34 = vpop.f32.mrb[7].mxu0  ;;  %v493_v57 = vmul.f32 0.1, %v487_v54 }
 0x2f0   :  { %v494_v35 = vmul.f32 0.1, %v489_v32 }
 0x2f1   :  { %v495_v2 = vmax.f32 %v487_v54, %v493_v57 }
 0x2f2   :  { %v496_v36 = vmax.f32 %v489_v32, %v494_v35 }
 0x2f4   :  { %v497_v37 = vpack.c.bf16 %v496_v36, %v496_v36 }
 0x2f6   :  { %1180 = vmatmul.mubr.bf16.vlgmr.msra.gmra.mrb[4].mxu1 %v497_v37 }
 0x2f7   :  { %1199 = vmatprep.mubr.msk.bf16.mxu1 %vm1420_vm0, %v1419_v1  ;;  %1184 = vmatpush3.bf16.msra.mxu1 %v1321_v47 }
 0x2f8   :  { %1185 = vmatprep.subr.bf16.mxu1 %v1419_v1 }
 0x2fb   :  { %1186 = vmatpush3.bf16.msra.mxu1 %v1322_v48 }
 0x2fc   :  { %1187 = vmatprep.subr.bf16.mxu1 %v1419_v1 }
 0x2ff   :  { %1188 = vmatpush3.bf16.msra.mxu1 %v1323_v49 }
 0x300   :  { %1189 = vmatprep.subr.bf16.mxu1 %v1419_v1 }
 0x303   :  { %1190 = vmatpush3.bf16.msra.mxu1 %v1324_v50 }
 0x304   :  { %1191 = vmatprep.subr.bf16.mxu1 %v1419_v1 }
 0x307   :  { %1192 = vmatpush3.bf16.msra.mxu1 %v1325_v51 }
 0x308   :  { %1193 = vmatprep.subr.bf16.mxu1 %v1419_v1 }
 0x30b   :  { %1194 = vmatpush3.bf16.msra.mxu1 %v1326_v52 }
 0x30c   :  { %1195 = vmatprep.subr.bf16.mxu1 %v1419_v1 }
 0x30f   :  { %1196 = vmatpush3.bf16.msra.mxu1 %v1327_v9 }
 0x310   :  { %1197 = vmatprep.subr.bf16.mxu1 %v1419_v1 }
 0x313   :  { %1198 = vmatpush3.bf16.msra.mxu1 %v1328_v10 }
 0x3c9   :  { %v605_v56 = vpop.f32.mrb[4].mxu1 }
 0x3ca   :  { %v606_v58 = vadd.f32 %v1061_v55, %v605_v56  ;;  %v1181_v59 = vpop.f32.mrb[5].mxu1 }
 0x3cb   :  { %v608_v60 = vpop.f32.mrb[6].mxu1 }
 0x3cc   :  { %v611_v61 = vmul.f32 0.1, %v606_v58  ;;  %v1182_v62 = vpop.f32.mrb[7].mxu1 }
 0x3ce   :  { %v612_v3 = vmax.f32 %v606_v58, %v611_v61 }
 0x3d0   :  { %v613_v4 = vadd.f32 %v612_v3, %v495_v2 }
 0x3d2   :  { %v614_v5 = vmul.f32 0.1, %v613_v4 }
 0x3d4   :  { %v615_v6 = vmax.f32 %v613_v4, %v614_v5 }
 0x3d6   :  { %v616_v7 = vadd.f32 %v615_v6, %v1544_v17 }
 0x3d8   :  { %v617_v8 = vpack.c.bf16 %v616_v7, %v616_v7 }
 0x3da   :  { %761 = vmatmul.mubr.bf16.vlgmr.msra.gmra.mrb[8].mxu0 %v617_v8 }
 0x3db   :  { %1219 = vmatprep.mubr.msk.bf16.mxu0 %vm1420_vm0, %v1419_v1  ;;  %1204 = vmatpush3.bf16.msra.mxu0 %v1329_v11 }
 0x3dc   :  { %1205 = vmatprep.subr.bf16.mxu0 %v1419_v1 }
 0x3df   :  { %1206 = vmatpush3.bf16.msra.mxu0 %v1330_v12 }
 0x3e0   :  { %1207 = vmatprep.subr.bf16.mxu0 %v1419_v1 }
 0x3e3   :  { %1208 = vmatpush3.bf16.msra.mxu0 %v1331_v13 }
 0x3e4   :  { %1209 = vmatprep.subr.bf16.mxu0 %v1419_v1 }
 0x3e7   :  { %1210 = vmatpush3.bf16.msra.mxu0 %v1332_v14 }
 0x3e8   :  { %1211 = vmatprep.subr.bf16.mxu0 %v1419_v1 }
 0x3eb   :  { %1212 = vmatpush3.bf16.msra.mxu0 %v1333_v25 }
 0x3ec   :  { %1213 = vmatprep.subr.bf16.mxu0 %v1419_v1 }
 0x3ef   :  { %1214 = vmatpush3.bf16.msra.mxu0 %v1334_v26 }
 0x3f0   :  { %1215 = vmatprep.subr.bf16.mxu0 %v1419_v1 }
 0x3f3   :  { %1216 = vmatpush3.bf16.msra.mxu0 %v1335_v0 }
 0x3f4   :  { %1217 = vmatprep.subr.bf16.mxu0 %v1419_v1 }
 0x3f7   :  { %1218 = vmatpush3.bf16.msra.mxu0 %v1336_v38 }
 0x4ad   :  { %v762_v17 = vpop.f32.mrb[8].mxu0 }
 0x4ae   :  { %v764_v18 = vpop.f32.mrb[9].mxu0  ;;  %v763_v28 = vadd.f32 %v762_v17, %v641_v27 }
 0x4af   :  { %v765_v19 = vadd.f32 %v764_v18, %v645_v16  ;;  %v766_v20 = vpop.f32.mrb[10].mxu0 }
 0x4b0   :  { %v767_v21 = vpop.f32.mrb[11].mxu0  ;;  %v769_v31 = vmul.f32 0.1, %v763_v28 }
 0x4b1   :  { %v770_v22 = vmul.f32 0.1, %v765_v19 }
 0x4b2   :  { %v771_v37 = vmax.f32 %v763_v28, %v769_v31 }
 0x4b3   :  { %v772_v24 = vmax.f32 %v765_v19, %v770_v22 }
 0x4b5   :  { %v773_v23 = vpack.c.bf16 %v772_v24, %v772_v24 }
 0x4b7   :  { %1200 = vmatmul.mubr.bf16.vlgmr.msra.gmra.mrb[8].mxu1 %v773_v23 }
 0x58a   :  { %v881_v30 = vpop.f32.mrb[8].mxu1 }
 0x58b   :  { %v882_v32 = vadd.f32 %v1088_v29, %v881_v30  ;;  %v1201_v33 = vpop.f32.mrb[9].mxu1 }
 0x58c   :  { %v884_v34 = vpop.f32.mrb[10].mxu1 }
 0x58d   :  { %v887_v35 = vmul.f32 0.1, %v882_v32  ;;  %v1202_v36 = vpop.f32.mrb[11].mxu1 }
 0x58f   :  { %v888_v39 = vmax.f32 %v882_v32, %v887_v35 }
 0x591   :  { %v889_v40 = vadd.f32 %v888_v39, %v771_v37 }
 0x593   :  { %v890_v1 = vmul.f32 0.1, %v889_v40 }
 0x595   :  { %v891_v41 = vmax.f32 %v889_v40, %v890_v1 }
 0x597   :  { %v892_v42 = vadd.f32 %v891_v41, %v616_v7 }
 0x599   :  { %v893_v43 = vpack.c.bf16 %v892_v42, %v892_v42 }
 0x59b   :  { %1220 = vmatmul.mubr.bf16.vlgmr.msra.gmra.mrb[12].mxu0 %v893_v43 }
 0x66e   :  { %v999_v44 = vpop.f32.mrb[12].mxu0 }
 0x66f   :  { %v1000_v45 = vadd.f32 %v1097_v63, %v999_v44  ;;  %v1221_v46 = vpop.f32.mrb[13].mxu0 }
 0x670   :  { %v1002_v47 = vpop.f32.mrb[14].mxu0 }
 0x671   :  { %v1106_v48 = vmul.f32 -1.442695, %v1000_v45  ;;  %v1222_v49 = vpop.f32.mrb[15].mxu0 }
 0x673   :  { %1337 = vpow2.f32 %v1106_v48 }
 0x67d   :  { %v1338_v50 = vpop.eup %1337 }
 0x67e   :  { %v1008_v51 = vadd.f32 1.0, %v1338_v50 }
 0x680   :  { %1339 = vrcp.f32 %v1008_v51 }
 0x68a   :  { %v1340_v52 = vpop.eup %1339 }
 0x68b   :  { %1011 = vst [vmem:[%s1600_s7] sm:$0xff] %v1340_v52 }
 0x68c   :  { %1016 = vsyncpa [#allocation3], 1 }
 0x68d   :  { %1017 = vsyncpa [#allocation5], 1 }

</bundles_post_ra>
